<compile_context>
chip_gen: v5e
topology: v5e:2x2
jax: 0.10.0
libtpu: 0.0.40
codegen_flags: <defaults>
</compile_context>

<pallas_src>
import functools
import math

import jax
import jax.numpy as jnp
from jax.experimental import pallas as pl
from jax.experimental.pallas import tpu as pltpu


_SQRT_2_OVER_PI = math.sqrt(2.0 / math.pi)   # plain Python float (no captured consts)


def _gelu_tanh(v):
    # tanh-approximate GELU; EUP tanh, VPU elementwise (inputs are f32).
    return 0.5 * v * (1.0 + jnp.tanh(_SQRT_2_OVER_PI * (v + 0.044715 * (v * v * v))))


def _dropout(v, rate):
    # Inverted dropout: integer threshold compare on raw PRNG bits, scale folded
    # into a single jnp.where (cheap VPU epilogue).
    bits = pltpu.bitcast(pltpu.prng_random_bits(v.shape), jnp.uint32)
    threshold = jnp.uint32(min(int(rate * 4294967296.0), 4294967295))
    scale = 1.0 / (1.0 - rate)
    return jnp.where(bits >= threshold, v * scale, 0.0)


# -----------------------------------------------------------------------------
# Kernels
# -----------------------------------------------------------------------------
def _mlp_kernel_resident(x_ref, w1_ref, b1_ref, w2_ref, b2_ref, o_ref, *,
                         drop_rate, seed, compute_dtype):
    """Whole hidden dim in VMEM: weights fetched once, no accumulator."""
    i = pl.program_id(0)
    x = x_ref[...].astype(compute_dtype)
    hid = jnp.dot(x, w1_ref[...], preferred_element_type=jnp.float32)
    hid = _gelu_tanh(hid + b1_ref[...].astype(jnp.float32))
    if drop_rate > 0.0:                                    # static Python gate
        pltpu.prng_seed(seed + 2 * i)
        hid = _dropout(hid, drop_rate)
    y = jnp.dot(hid.astype(compute_dtype), w2_ref[...],
                preferred_element_type=jnp.float32)
    y = y + b2_ref[...].astype(jnp.float32)
    if drop_rate > 0.0:                                    # static Python gate
        pltpu.prng_seed(seed + 2 * i + 1)
        y = _dropout(y, drop_rate)
    o_ref[...] = y.astype(o_ref.dtype)


def _mlp_kernel_streamed(x_ref, w1_ref, b1_ref, w2_ref, b2_ref, o_ref, *scratch,
                         drop_rate, seed, nh, compute_dtype):
    """Hidden dim streamed in blocks; output tile resident across the h axis."""
    acc_ref = scratch[0] if scratch else o_ref   # f32 scratch only if o is narrower
    i = pl.program_id(0)
    h = pl.program_id(1)

    @pl.when(h == 0)
    def _init():
        acc_ref[...] = jnp.zeros_like(acc_ref)

    x = x_ref[...].astype(compute_dtype)
    hid = jnp.dot(x, w1_ref[...], preferred_element_type=jnp.float32)
    hid = _gelu_tanh(hid + b1_ref[...].astype(jnp.float32))
    if drop_rate > 0.0:                                    # static Python gate
        pltpu.prng_seed(seed + i * (nh + 1) + h)
        hid = _dropout(hid, drop_rate)
    acc_ref[...] += jnp.dot(hid.astype(compute_dtype), w2_ref[...],
                            preferred_element_type=jnp.float32)

    @pl.when(h == nh - 1)
    def _finalize():
        y = acc_ref[...].astype(jnp.float32) + b2_ref[...].astype(jnp.float32)
        if drop_rate > 0.0:                                # static Python gate
            pltpu.prng_seed(seed + i * (nh + 1) + nh)
            y = _dropout(y, drop_rate)
        o_ref[...] = y.astype(o_ref.dtype)


# -----------------------------------------------------------------------------
# Wrapper
# -----------------------------------------------------------------------------
def _round_up(a, m):
    return (a + m - 1) // m * m


def _cdiv(a, b):
    return -(-a // b)


def _vmem_capacity():
    try:
        return int(pltpu.get_tpu_info().vmem_capacity_bytes)
    except Exception:
        return 64 * 1024 * 1024   # conservative (v7x per-TC size)


def prepare_mlp_params(w1, b1, w2, b2, compute_dtype=jnp.bfloat16):
    """Cast + lane/sublane-pad weights ONCE (not per forward call)."""
    K, H = w1.shape
    H2, N = w2.shape
    assert H2 == H and b1.shape == (H,) and b2.shape == (N,)
    Kp, Hp, Np = _round_up(K, 128), _round_up(H, 128), _round_up(N, 128)

    w1p = w1.astype(compute_dtype)
    w2p = w2.astype(compute_dtype)
    if (Kp, Hp) != (K, H):
        w1p = jnp.pad(w1p, ((0, Kp - K), (0, Hp - H)))
    if (Hp, Np) != (H, N):
        w2p = jnp.pad(w2p, ((0, Hp - H), (0, Np - N)))
    b1p = b1.astype(jnp.float32)
    b2p = b2.astype(jnp.float32)
    if Hp != H:
        b1p = jnp.pad(b1p, (0, Hp - H))
    if Np != N:
        b2p = jnp.pad(b2p, (0, Np - N))
    return dict(w1=w1p, b1=b1p.reshape(1, Hp), w2=w2p, b2=b2p.reshape(1, Np),
                in_features=K, hidden_features=H, out_features=N)


def mlp_forward(x, params, *, drop_rate=0.0, training=False, seed=0,
                tile_m=512, tile_h=1024, force_streamed=False):
    """Fused MLP forward. x: (..., in_features)."""
    w1p, b1p, w2p, b2p = params["w1"], params["b1"], params["w2"], params["b2"]
    K = params["in_features"]
    H = params["hidden_features"]
    N = params["out_features"]
    Kp, Hp0 = w1p.shape
    Np = w2p.shape[1]
    compute_dtype = w1p.dtype
    cbytes = jnp.dtype(compute_dtype).itemsize
    xbytes = x.dtype.itemsize

    orig_shape = x.shape
    assert orig_shape[-1] == K
    x2 = x.reshape(-1, K)
    M = x2.shape[0]

    use_drop = bool(training) and float(drop_rate) > 0.0
    rate = float(drop_rate) if use_drop else 0.0
    assert rate < 1.0, "drop rate must be < 1"

    # ---- row tiling: balanced tiles, pad only a few rows, >=2 tiles for megacore.
    M8 = _round_up(max(M, 1), 8)
    if M8 > tile_m:
        n_rows = _cdiv(M8, tile_m)
    elif M8 >= 512:
        n_rows = 2
    else:
        n_rows = 1
    tm = _round_up(_cdiv(M8, n_rows), 8)
    Mp = n_rows * tm

    # ---- VMEM budget (per-generation: 128 MiB v5e/v6e, 64 MiB v7x per TC).
    cap = _vmem_capacity()
    budget = cap // 2
    vmem_limit = min(cap * 3 // 4, 96 * 1024 * 1024)

    x_tile = tm * Kp * xbytes
    o_tile = tm * Np * xbytes
    w_bytes = (Kp * Hp0 + Hp0 * Np) * cbytes
    b_bytes = (Hp0 + Np) * 4
    resident_ws = 2 * (x_tile + o_tile + b_bytes) + 2 * w_bytes
    use_resident = (not force_streamed) and resident_ws <= budget

    # ---- pad x only if needed.
    if (Mp, Kp) != (M, K):
        xp = jnp.pad(x2, ((0, Mp - M), (0, Kp - K)))
    else:
        xp = x2

    cost = pl.CostEstimate(
        flops=2 * M * K * H + 2 * M * H * N,
        transcendentals=M * H,
        bytes_accessed=(M * K * xbytes + (K * H + H * N) * cbytes
                        + (H + N) * 4 + M * N * xbytes))

    if use_resident:
        kernel = functools.partial(_mlp_kernel_resident, drop_rate=rate,
                                   seed=int(seed), compute_dtype=compute_dtype)
        out = pl.pallas_call(
            kernel,
            out_shape=jax.ShapeDtypeStruct((Mp, Np), x.dtype),
            grid_spec=pltpu.PrefetchScalarGridSpec(
                num_scalar_prefetch=0,
                grid=(n_rows,),
                in_specs=[
                    pl.BlockSpec((tm, Kp), lambda i: (i, 0)),      # x row tile
                    pl.BlockSpec((Kp, Hp0), lambda i: (0, 0)),     # W1 (resident)
                    pl.BlockSpec((1, Hp0), lambda i: (0, 0)),      # b1
                    pl.BlockSpec((Hp0, Np), lambda i: (0, 0)),     # W2 (resident)
                    pl.BlockSpec((1, Np), lambda i: (0, 0)),       # b2
                ],
                out_specs=pl.BlockSpec((tm, Np), lambda i: (i, 0))),
            compiler_params=pltpu.CompilerParams(
                dimension_semantics=("parallel",),
                vmem_limit_bytes=int(vmem_limit)),
            cost_estimate=cost,
        )(xp, w1p, b1p, w2p, b2p)
    else:
        # ---- streamed hidden dimension: pick th so the working set fits VMEM.
        nh = max(1, _cdiv(Hp0, max(tile_h, 128)))
        needs_acc = jnp.dtype(x.dtype) != jnp.dtype(jnp.float32)
        while True:
            th = _round_up(_cdiv(Hp0, nh), 128)
            ws = 2 * (x_tile + Kp * th * cbytes + th * Np * cbytes
                      + th * 4 + Np * 4 + o_tile)
            if needs_acc:
                ws += tm * Np * 4
            if ws <= budget or th <= 128:
                break
            nh += 1
        Hp = nh * th
        if Hp != Hp0:   # rare: re-pad cached slabs so th divides Hp
            w1b = jnp.pad(w1p, ((0, 0), (0, Hp - Hp0)))
            b1b = jnp.pad(b1p, ((0, 0), (0, Hp - Hp0)))
            w2b = jnp.pad(w2p, ((0, Hp - Hp0), (0, 0)))
        else:
            w1b, b1b, w2b = w1p, b1p, w2p

        kernel = functools.partial(_mlp_kernel_streamed, drop_rate=rate,
                                   seed=int(seed), nh=nh,
                                   compute_dtype=compute_dtype)
        out = pl.pallas_call(
            kernel,
            out_shape=jax.ShapeDtypeStruct((Mp, Np), x.dtype),
            grid_spec=pltpu.PrefetchScalarGridSpec(
                num_scalar_prefetch=0,
                grid=(n_rows, nh),
                in_specs=[
                    pl.BlockSpec((tm, Kp), lambda i, h: (i, 0)),   # x row tile
                    pl.BlockSpec((Kp, th), lambda i, h: (0, h)),   # W1 hidden slab
                    pl.BlockSpec((1, th), lambda i, h: (0, h)),    # b1 slab
                    pl.BlockSpec((th, Np), lambda i, h: (h, 0)),   # W2 hidden slab
                    pl.BlockSpec((1, Np), lambda i, h: (0, 0)),    # b2
                ],
                out_specs=pl.BlockSpec((tm, Np), lambda i, h: (i, 0)),
                scratch_shapes=([pltpu.VMEM((tm, Np), jnp.float32)]
                                if needs_acc else [])),
            compiler_params=pltpu.CompilerParams(
                dimension_semantics=("parallel", "arbitrary"),
                vmem_limit_bytes=int(vmem_limit)),
            cost_estimate=cost,
        )(xp, w1b, b1b, w2b, b2p)

    out = out[:M, :N]
    return out.reshape(*orig_shape[:-1], N)


class Mlp:
    """Mirror of the PyTorch Mlp module (fc1 -> GELU -> drop -> fc2 -> drop)."""

    def __init__(self, in_features, hidden_features=None, out_features=None,
                 drop=0.0, *, key, dtype=jnp.float32, compute_dtype=jnp.bfloat16):
        out_features = out_features or in_features
        hidden_features = hidden_features or in_features
        k1, k2, k3, k4 = jax.random.split(key, 4)
        # torch nn.Linear default init: U(-1/sqrt(fan_in), 1/sqrt(fan_in)).
        lim1 = 1.0 / math.sqrt(in_features)
        lim2 = 1.0 / math.sqrt(hidden_features)
        self.w1 = jax.random.uniform(k1, (in_features, hidden_features), dtype, -lim1, lim1)
        self.b1 = jax.random.uniform(k2, (hidden_features,), dtype, -lim1, lim1)
        self.w2 = jax.random.uniform(k3, (hidden_features, out_features), dtype, -lim2, lim2)
        self.b2 = jax.random.uniform(k4, (out_features,), dtype, -lim2, lim2)
        self.drop = drop
        self.training = False
        self.compute_dtype = compute_dtype
        # Pad + cast weights once (no per-call padding / casting).
        self.params = prepare_mlp_params(self.w1, self.b1, self.w2, self.b2,
                                         compute_dtype=compute_dtype)

    def __call__(self, x, *, rng_seed=0, **kwargs):
        return mlp_forward(x, self.params, drop_rate=self.drop,
                           training=self.training, seed=rng_seed, **kwargs)


# -----------------------------------------------------------------------------
# Self-test
# -----------------------------------------------------------------------------
def _ref_mlp(x, w1, b1, w2, b2, compute_dtype):
    """Pure-JAX reference with the same bf16-compute / f32-accumulate recipe."""
    shape = x.shape
    x2 = x.reshape(-1, shape[-1]).astype(jnp.float32)
    cd = compute_dtype
    h = jnp.dot(x2.astype(cd), w1.astype(cd), preferred_element_type=jnp.float32)
    h = _gelu_tanh(h + b1.astype(jnp.float32))
    y = jnp.dot(h.astype(cd), w2.astype(cd), preferred_element_type=jnp.float32)
    y = y + b2.astype(jnp.float32)
    return y.reshape(*shape[:-1], w2.shape[1])


if __name__ == "__main__":
    root = jax.random.PRNGKey(0)
    k_par, k_x, k_par2, k_x2 = jax.random.split(root, 4)

    # Case 1: Swin-like token tensor (B, L, C), hidden = 4 * C — resident path.
    B, L, C, H = 2, 16, 64, 256
    x = jax.random.normal(k_x, (B, L, C), dtype=jnp.float32)
    mlp = Mlp(in_features=C, hidden_features=H, key=k_par)
    out = jax.block_until_ready(mlp(x))
    ref = _ref_mlp(x, mlp.w1, mlp.b1, mlp.w2, mlp.b2, mlp.compute_dtype)
    assert out.shape == x.shape and out.dtype == x.dtype
    assert jnp.allclose(out, ref, atol=2e-2, rtol=2e-2), \
        float(jnp.max(jnp.abs(out - ref)))

    # Case 2: ragged / non-128-multiple shapes — exercises the padding path.
    B2, L2, C2, H2, O2 = 2, 7, 20, 50, 36
    x2 = jax.random.normal(k_x2, (B2, L2, C2), dtype=jnp.float32)
    mlp2 = Mlp(in_features=C2, hidden_features=H2, out_features=O2, key=k_par2)
    out2 = jax.block_until_ready(mlp2(x2))
    ref2 = _ref_mlp(x2, mlp2.w1, mlp2.b1, mlp2.w2, mlp2.b2, mlp2.compute_dtype)
    assert out2.shape == (B2, L2, O2) and out2.dtype == x2.dtype
    assert jnp.allclose(out2, ref2, atol=2e-2, rtol=2e-2), \
        float(jnp.max(jnp.abs(out2 - ref2)))

    # Case 3: force the streamed (hidden-block accumulator) kernel, f32 output
    # (accumulates directly into o_ref, no scratch).
    out3 = jax.block_until_ready(mlp(x, force_streamed=True, tile_h=128))
    assert out3.shape == x.shape and out3.dtype == x.dtype
    assert jnp.allclose(out3, ref, atol=2e-2, rtol=2e-2), \
        float(jnp.max(jnp.abs(out3 - ref)))

    # Case 4: streamed kernel with bf16 I/O (uses the f32 accumulator scratch).
    x_bf16 = x.astype(jnp.bfloat16)
    out4 = jax.block_until_ready(mlp(x_bf16, force_streamed=True, tile_h=128))
    assert out4.shape == x.shape and out4.dtype == jnp.bfloat16
    assert jnp.allclose(out4.astype(jnp.float32), ref, atol=5e-2, rtol=5e-2), \
        float(jnp.max(jnp.abs(out4.astype(jnp.float32) - ref)))

    print("KERNEL_OK")
</pallas_src>

<mosaic_0001>
module attributes {stable_mosaic.version = 11 : i64} {
  func.func @_mlp_kernel_resident(%arg0: i32, %arg1: memref<32x128xf32, #tpu.memory_space<vmem>>, %arg2: memref<128x256xbf16, #tpu.memory_space<vmem>>, %arg3: memref<1x256xf32, #tpu.memory_space<vmem>>, %arg4: memref<256x128xbf16, #tpu.memory_space<vmem>>, %arg5: memref<1x128xf32, #tpu.memory_space<vmem>>, %arg6: memref<32x128xf32, #tpu.memory_space<vmem>>) attributes {dimension_semantics = [#tpu.dimension_semantics<parallel>], iteration_bounds = array<i64: 1>, scalar_prefetch = 0 : i64, scratch_operands = 0 : i64, tpu.core_type = #tpu.core_type<tc>, window_params = [{transform_indices = @transform_0, window_bounds = array<i64: 32, 128>}, {pipeline_mode = #tpu.pipeline_mode<synchronous>, transform_indices = @transform_1, window_bounds = array<i64: 128, 256>}, {pipeline_mode = #tpu.pipeline_mode<synchronous>, transform_indices = @transform_2, window_bounds = array<i64: 1, 256>}, {pipeline_mode = #tpu.pipeline_mode<synchronous>, transform_indices = @transform_3, window_bounds = array<i64: 256, 128>}, {pipeline_mode = #tpu.pipeline_mode<synchronous>, transform_indices = @transform_4, window_bounds = array<i64: 1, 128>}, {transform_indices = @transform_5, window_bounds = array<i64: 32, 128>}]} {
    %c0 = arith.constant 0 : index
    %c0_0 = arith.constant 0 : index
    %0 = vector.load %arg1[%c0, %c0_0] : memref<32x128xf32, #tpu.memory_space<vmem>>, vector<32x128xf32>
    %1 = arith.truncf %0 : vector<32x128xf32> to vector<32x128xbf16>
    %c0_1 = arith.constant 0 : index
    %c0_2 = arith.constant 0 : index
    %2 = vector.load %arg2[%c0_1, %c0_2] : memref<128x256xbf16, #tpu.memory_space<vmem>>, vector<128x256xbf16>
    %cst = arith.constant dense<0.000000e+00> : vector<32x256xf32>
    %3 = tpu.matmul %1, %2, %cst {dimension_numbers = #tpu.dot_dimension_numbers<[1], [0], [0], [1], [0, 0, 1, 1], [], []>} : vector<32x128xbf16>, vector<128x256xbf16>, vector<32x256xf32> -> vector<32x256xf32>
    %c0_3 = arith.constant 0 : index
    %c0_4 = arith.constant 0 : index
    %4 = vector.load %arg3[%c0_3, %c0_4] : memref<1x256xf32, #tpu.memory_space<vmem>>, vector<1x256xf32>
    %5 = vector.broadcast %4 : vector<1x256xf32> to vector<32x256xf32>
    %6 = arith.addf %3, %5 : vector<32x256xf32>
    %cst_5 = arith.constant 5.000000e-01 : f32
    %7 = vector.broadcast %cst_5 : f32 to vector<32x256xf32>
    %8 = arith.mulf %7, %6 : vector<32x256xf32>
    %9 = arith.mulf %6, %6 : vector<32x256xf32>
    %10 = arith.mulf %9, %6 : vector<32x256xf32>
    %cst_6 = arith.constant 4.471500e-02 : f32
    %11 = vector.broadcast %cst_6 : f32 to vector<32x256xf32>
    %12 = arith.mulf %11, %10 : vector<32x256xf32>
    %13 = arith.addf %6, %12 : vector<32x256xf32>
    %cst_7 = arith.constant 0.797884583 : f32
    %14 = vector.broadcast %cst_7 : f32 to vector<32x256xf32>
    %15 = arith.mulf %14, %13 : vector<32x256xf32>
    %16 = math.tanh %15 : vector<32x256xf32>
    %cst_8 = arith.constant 1.000000e+00 : f32
    %17 = vector.broadcast %cst_8 : f32 to vector<32x256xf32>
    %18 = arith.addf %17, %16 : vector<32x256xf32>
    %19 = arith.mulf %8, %18 : vector<32x256xf32>
    %20 = arith.truncf %19 : vector<32x256xf32> to vector<32x256xbf16>
    %c0_9 = arith.constant 0 : index
    %c0_10 = arith.constant 0 : index
    %21 = vector.load %arg4[%c0_9, %c0_10] : memref<256x128xbf16, #tpu.memory_space<vmem>>, vector<256x128xbf16>
    %cst_11 = arith.constant dense<0.000000e+00> : vector<32x128xf32>
    %22 = tpu.matmul %20, %21, %cst_11 {dimension_numbers = #tpu.dot_dimension_numbers<[1], [0], [0], [1], [0, 0, 1, 1], [], []>} : vector<32x256xbf16>, vector<256x128xbf16>, vector<32x128xf32> -> vector<32x128xf32>
    %c0_12 = arith.constant 0 : index
    %c0_13 = arith.constant 0 : index
    %23 = vector.load %arg5[%c0_12, %c0_13] : memref<1x128xf32, #tpu.memory_space<vmem>>, vector<1x128xf32>
    %24 = vector.broadcast %23 : vector<1x128xf32> to vector<32x128xf32>
    %25 = arith.addf %22, %24 : vector<32x128xf32>
    %c0_14 = arith.constant 0 : index
    %c0_15 = arith.constant 0 : index
    %26 = vector.load %arg6[%c0_14, %c0_15] : memref<32x128xf32, #tpu.memory_space<vmem>>, vector<32x128xf32>
    tpu.vector_store %arg6[%c0_14, %c0_15], %25 {strides = array<i32>} : memref<32x128xf32, #tpu.memory_space<vmem>>, vector<32x128xf32>,
    return
  }
  func.func @transform_0(%arg0: i32) -> (i32, i32) {
    %c0_i32 = arith.constant 0 : i32
    %c0_i32_0 = arith.constant 0 : i32
    return %arg0, %c0_i32 : i32, i32
  }
  func.func @transform_1(%arg0: i32) -> (i32, i32) {
    %c0_i32 = arith.constant 0 : i32
    %c0_i32_0 = arith.constant 0 : i32
    %c0_i32_1 = arith.constant 0 : i32
    return %c0_i32, %c0_i32_0 : i32, i32
  }
  func.func @transform_2(%arg0: i32) -> (i32, i32) {
    %c0_i32 = arith.constant 0 : i32
    %c0_i32_0 = arith.constant 0 : i32
    %c0_i32_1 = arith.constant 0 : i32
    return %c0_i32, %c0_i32_0 : i32, i32
  }
  func.func @transform_3(%arg0: i32) -> (i32, i32) {
    %c0_i32 = arith.constant 0 : i32
    %c0_i32_0 = arith.constant 0 : i32
    %c0_i32_1 = arith.constant 0 : i32
    return %c0_i32, %c0_i32_0 : i32, i32
  }
  func.func @transform_4(%arg0: i32) -> (i32, i32) {
    %c0_i32 = arith.constant 0 : i32
    %c0_i32_0 = arith.constant 0 : i32
    %c0_i32_1 = arith.constant 0 : i32
    return %c0_i32, %c0_i32_0 : i32, i32
  }
  func.func @transform_5(%arg0: i32) -> (i32, i32) {
    %c0_i32 = arith.constant 0 : i32
    %c0_i32_0 = arith.constant 0 : i32
    return %arg0, %c0_i32 : i32, i32
  }
}

</mosaic_0001>

<bundles_post_ra>
// kernel: tpu_custom_call.1
= control target key start
LH: loop header
LB: loop body
LE: loop exit
PB: predicated region body
PF: predicated region fallthrough
CT: control target
= control target key end

     0   :  { %10 = vsyncpa [#allocation3], 0  ;;  %s893_s0 = inlined_call_operand.hbm [shape: f32[32,128], index: 0, kind: input, shape index: {}]   ;;  %s894_s1 = inlined_call_operand.hbm [shape: bf16[128,256], index: 1, kind: input, shape index: {}]   ;;  %s895_s2 = inlined_call_operand.hbm [shape: f32[1,256], index: 2, kind: input, shape index: {}]   ;;  %s896_s3 = inlined_call_operand.hbm [shape: bf16[256,128], index: 3, kind: input, shape index: {}]   ;;  %s897_s4 = inlined_call_operand.vmem [shape: f32[1,128], index: 4, kind: input, shape index: {}]   ;;  %s898_s5 = inlined_call_operand.hbm [shape: f32[32,128], index: 5, kind: output, shape index: {}]  }
   0x1   :  { %11 = vsyncpa [#allocation6], 0 }
   0x2   :  { %12 = vsyncpa [#allocation9], 0 }
   0x3   :  { %13 = vsyncpa [#allocation4], 0  ;;  %s31_s20 = sshll.u32 %s894_s1, 4  ;;  %s813_s21 = smov [#allocation5]   ;;  %s32_s20 = int_to_ptr.hbm [resolvable:$true] %s31_s20 }
   0x4   :  { %s33_s22 = sshll.u32 %s813_s21, 4  ;;  %s18_s25 = sshll.u32 %s893_s0, 4  ;;  %s34_s22 = int_to_ptr.vmem [resolvable:$true] %s33_s22  ;;  %s19_s25 = int_to_ptr.hbm [resolvable:$true] %s18_s25 }
   0x5   :  { %s814_s26 = smov 128   ;;  %s815_s27 = smov 8  }
   0x6   :  { %39 = dma.hbm_to_vmem [thread:$0]  %s32_s20, 2048, %s34_s22, [#allocation6], %s814_s26, %s814_s26, %s815_s27  }
   0x7   :  { %s816_s28 = smov [#allocation2]   ;;  %s45_s1 = sshll.u32 %s895_s2, 4  ;;  %s46_s1 = int_to_ptr.hbm [resolvable:$true] %s45_s1 }
   0x8   :  { %s20_s29 = sshll.u32 %s816_s28, 4  ;;  %s55_s8 = sshll.u32 %s896_s3, 4  ;;  %s21_s29 = int_to_ptr.vmem [resolvable:$true] %s20_s29  ;;  %s56_s8 = int_to_ptr.hbm [resolvable:$true] %s55_s8 }
   0x9   :  { %26 = dma.hbm_to_vmem [thread:$0]  %s19_s25, 512, %s21_s29, [#allocation3], %s814_s26, %s814_s26, %s815_s27  }
   0xa   :  { %s817_s9 = smov [#allocation7]   ;;  %s818_s11 = smov [#allocation8]  }
   0xb   :  { %s47_s10 = sshll.u32 %s817_s9, 4  ;;  %s57_s12 = sshll.u32 %s818_s11, 4  ;;  %s48_s10 = int_to_ptr.vmem [resolvable:$true] %s47_s10  ;;  %s58_s12 = int_to_ptr.vmem [resolvable:$true] %s57_s12 }
   0xc   :  { %50 = dma.hbm_to_vmem [thread:$0]  %s46_s1, 32, %s48_s10, [#allocation6]  }
   0xd   :  { %s819_s13 = smov 64   ;;  %s820_s2 = smov 4  }
   0xe   :  { %63 = dma.hbm_to_vmem [thread:$0]  %s56_s8, 2048, %s58_s12, [#allocation9], %s819_s13, %s819_s13, %s820_s2  }
   0xf   :  { %805 = dma.done.wait [#allocation3], 512  }
  0x10   :  { %806 = vsyncadd [#allocation3], 4294966784 }
  0x11   :  { %807 = dma.done.wait [#allocation6], 2080  }
  0x12   :  { %808 = vsyncadd [#allocation6], 4294965216 }
  0x13   :  { %809 = dma.done.wait [#allocation9], 2048  }
  0x14   :  { %810 = vsyncadd [#allocation9], 4294965248  ;;  %v557_v0 = vld [vmem:[#allocation5 + $0x70] sm:$0xf]  ;;  %v642_v1 = vld [vmem:[#allocation5 + $0x74] sm:$0xf0] }
  0x15   :  { %v641_v2 = vld [vmem:[#allocation5 + $0x74] sm:$0xf]  ;;  %v558_v3 = vor.u32 %v642_v1, %v557_v0  ;;  %v559_v4 = vld [vmem:[#allocation5 + $0x78] sm:$0xf0]  ;;  %v549_v5 = vld [vmem:[#allocation5 + $0x60] sm:$0xf] }
  0x16   :  { %v640_v6 = vld [vmem:[#allocation5 + $0x64] sm:$0xf0]  ;;  %v562_v7 = vor.u32 %v641_v2, %v559_v4  ;;  %v639_v8 = vld [vmem:[#allocation5 + $0x64] sm:$0xf]  ;;  %v551_v9 = vld [vmem:[#allocation5 + $0x68] sm:$0xf0] }
  0x17   :  { %190 = vmatpush.bf16.msra.mxu0 %v558_v3  ;;  %v550_v10 = vor.u32 %v640_v6, %v549_v5  ;;  %v554_v11 = vor.u32 %v639_v8, %v551_v9  ;;  %v541_v12 = vld [vmem:[#allocation5 + $0x50] sm:$0xf]  ;;  %v638_v13 = vld [vmem:[#allocation5 + $0x54] sm:$0xf0]  ;;  %v637_v14 = vld [vmem:[#allocation5 + $0x54] sm:$0xf] }
  0x18   :  { %209 = vmatpush.bf16.msra.mxu1 %v562_v7  ;;  %v543_v15 = vld [vmem:[#allocation5 + $0x58] sm:$0xf0]  ;;  %v542_v16 = vor.u32 %v638_v13, %v541_v12  ;;  %v533_v18 = vld [vmem:[#allocation5 + $0x40] sm:$0xf]  ;;  %v636_v19 = vld [vmem:[#allocation5 + $0x44] sm:$0xf0] }
  0x19   :  { %v546_v17 = vor.u32 %v637_v14, %v543_v15  ;;  %v635_v20 = vld [vmem:[#allocation5 + $0x44] sm:$0xf]  ;;  %v535_v21 = vld [vmem:[#allocation5 + $0x48] sm:$0xf0]  ;;  %v534_v22 = vor.u32 %v636_v19, %v533_v18  ;;  %v525_v24 = vld [vmem:[#allocation5 + $0x30] sm:$0xf] }
  0x1a   :  { %v538_v23 = vor.u32 %v635_v20, %v535_v21  ;;  %v634_v25 = vld [vmem:[#allocation5 + $0x34] sm:$0xf0]  ;;  %v633_v26 = vld [vmem:[#allocation5 + $0x34] sm:$0xf]  ;;  %v527_v27 = vld [vmem:[#allocation5 + $0x38] sm:$0xf0] }
  0x1b   :  { %191 = vmatpush.bf16.msra.mxu0 %v550_v10  ;;  %v526_v28 = vor.u32 %v634_v25, %v525_v24  ;;  %v530_v29 = vor.u32 %v633_v26, %v527_v27  ;;  %v517_v30 = vld [vmem:[#allocation5 + $0x20] sm:$0xf]  ;;  %v632_v31 = vld [vmem:[#allocation5 + $0x24] sm:$0xf0]  ;;  %v631_v32 = vld [vmem:[#allocation5 + $0x24] sm:$0xf] }
  0x1c   :  { %210 = vmatpush.bf16.msra.mxu1 %v554_v11  ;;  %v519_v33 = vld [vmem:[#allocation5 + $0x28] sm:$0xf0]  ;;  %v518_v34 = vor.u32 %v632_v31, %v517_v30  ;;  %v509_v36 = vld [vmem:[#allocation5 + $0x10] sm:$0xf]  ;;  %v630_v37 = vld [vmem:[#allocation5 + $0x14] sm:$0xf0] }
  0x1d   :  { %v522_v35 = vor.u32 %v631_v32, %v519_v33  ;;  %v629_v38 = vld [vmem:[#allocation5 + $0x14] sm:$0xf]  ;;  %v511_v39 = vld [vmem:[#allocation5 + $0x18] sm:$0xf0]  ;;  %v510_v40 = vor.u32 %v630_v37, %v509_v36  ;;  %v501_v42 = vld [vmem:[#allocation5] sm:$0xf] }
  0x1e   :  { %v514_v41 = vor.u32 %v629_v38, %v511_v39  ;;  %v628_v43 = vld [vmem:[#allocation5 + $0x4] sm:$0xf0]  ;;  %v627_v44 = vld [vmem:[#allocation5 + $0x4] sm:$0xf]  ;;  %v503_v45 = vld [vmem:[#allocation5 + $0x8] sm:$0xf0] }
  0x1f   :  { %192 = vmatpush.bf16.msra.mxu0 %v542_v16  ;;  %v502_v46 = vor.u32 %v628_v43, %v501_v42  ;;  %v82_v47 = vld [vmem:[#allocation2] sm:$0xff]  ;;  %v83_v48 = vld [vmem:[#allocation2 + $0x8] sm:$0xff]  ;;  %v506_v49 = vor.u32 %v627_v44, %v503_v45  ;;  %v84_v51 = vld [vmem:[#allocation2 + $0x10] sm:$0xff]  ;;  %s821_s15 = smov [#allocation10]   ;;  %s484_s18 = sshll.u32 %s898_s5, 4  ;;  %s485_s18 = int_to_ptr.hbm [resolvable:$true] %s484_s18 }
  0x20   :  { %211 = vmatpush.bf16.msra.mxu1 %v546_v17  ;;  %v86_v50 = vpack.c.bf16 %v83_v48, %v82_v47  ;;  %v85_v52 = vld [vmem:[#allocation2 + $0x18] sm:$0xff]  ;;  %v648_v58 = vld [vmem:[#allocation8 + $0x28] sm:$0xff]  ;;  %v647_v60 = vld [vmem:[#allocation8 + $0x20] sm:$0xff]  ;;  %s482_s16 = sshll.u32 %s821_s15, 4  ;;  %s483_s16 = int_to_ptr.vmem [resolvable:$true] %s482_s16 }
  0x21   :  { %v87_v53 = vpack.c.bf16 %v85_v52, %v84_v51  ;;  %v650_v54 = vld [vmem:[#allocation8 + $0x38] sm:$0xff]  ;;  %v649_v56 = vld [vmem:[#allocation8 + $0x30] sm:$0xff]  ;;  %v656_v59 = vld [vmem:[#allocation8 + $0x68] sm:$0xff] }
  0x22   :  { %v658_v55 = vld [vmem:[#allocation8 + $0x78] sm:$0xff]  ;;  %436 = vmatpush.bf16.msra.mxu2 %v650_v54  ;;  %v657_v57 = vld [vmem:[#allocation8 + $0x70] sm:$0xff]  ;;  %v655_v61 = vld [vmem:[#allocation8 + $0x60] sm:$0xff] }
  0x23   :  { %193 = vmatpush.bf16.msra.mxu0 %v534_v22  ;;  %455 = vmatpush.bf16.msra.mxu3 %v658_v55  ;;  %v646_v62 = vld [vmem:[#allocation8 + $0x18] sm:$0xff]  ;;  %v645_v0 = vld [vmem:[#allocation8 + $0x10] sm:$0xff]  ;;  %v644_v3 = vld [vmem:[#allocation8 + $0x8] sm:$0xff] }
  0x24   :  { %212 = vmatpush.bf16.msra.mxu1 %v538_v23  ;;  %v654_v63 = vld [vmem:[#allocation8 + $0x58] sm:$0xff]  ;;  %v653_v1 = vld [vmem:[#allocation8 + $0x50] sm:$0xff]  ;;  %v652_v4 = vld [vmem:[#allocation8 + $0x48] sm:$0xff] }
  0x25   :  { %v104_v2 = vld [vmem:[#allocation7] sm:$0x3]  ;;  %v643_v7 = vld [vmem:[#allocation8] sm:$0xff] }
  0x26   :  { %437 = vmatpush.bf16.msra.mxu2 %v649_v56  ;;  %v106_v5 = vperm.slane %v104_v2, 0  ;;  %v107_v6 = vperm.slane %v104_v2, 1  ;;  %v651_v8 = vld [vmem:[#allocation8 + $0x40] sm:$0xff] }
  0x27   :  { %194 = vmatpush.bf16.msra.mxu0 %v526_v28  ;;  %456 = vmatpush.bf16.msra.mxu3 %v657_v57 }
  0x28   :  { %213 = vmatpush.bf16.msra.mxu1 %v530_v29 }
  0x2a   :  { %438 = vmatpush.bf16.msra.mxu2 %v648_v58 }
  0x2b   :  { %195 = vmatpush.bf16.msra.mxu0 %v518_v34  ;;  %457 = vmatpush.bf16.msra.mxu3 %v656_v59 }
  0x2c   :  { %214 = vmatpush.bf16.msra.mxu1 %v522_v35 }
  0x2e   :  { %439 = vmatpush.bf16.msra.mxu2 %v647_v60 }
  0x2f   :  { %196 = vmatpush.bf16.msra.mxu0 %v510_v40  ;;  %458 = vmatpush.bf16.msra.mxu3 %v655_v61 }
  0x30   :  { %215 = vmatpush.bf16.msra.mxu1 %v514_v41 }
  0x32   :  { %440 = vmatpush.bf16.msra.mxu2 %v646_v62 }
  0x33   :  { %197 = vmatpush.bf16.msra.mxu0 %v502_v46  ;;  %459 = vmatpush.bf16.msra.mxu3 %v654_v63 }
  0x34   :  { %216 = vmatpush.bf16.msra.mxu1 %v506_v49 }
  0x36   :  { %198 = vmatmul.bf16.vlgmr.msra.gmra.mxu0 %v86_v50  ;;  %441 = vmatpush.bf16.msra.mxu2 %v645_v0 }
  0x37   :  { %217 = vmatmul.bf16.vlgmr.msra.gmra.mxu1 %v86_v50  ;;  %460 = vmatpush.bf16.msra.mxu3 %v653_v1 }
  0x3a   :  { %442 = vmatpush.bf16.msra.mxu2 %v644_v3 }
  0x3b   :  { %461 = vmatpush.bf16.msra.mxu3 %v652_v4 }
  0x3e   :  { %443 = vmatpush.bf16.msra.mxu2 %v643_v7 }
  0x3f   :  { %462 = vmatpush.bf16.msra.mxu3 %v651_v8 }
  0x46   :  { %203 = vmatmul.bf16.gmra.mxu0 %v87_v53 }
  0x47   :  { %222 = vmatmul.bf16.gmra.mxu1 %v87_v53 }
  0xb3   :  { %v199_v9 = vpop.f32.mrf.mxu0 }
  0xb4   :  { %v200_v10 = vadd.f32 %v199_v9, %v106_v5  ;;  %v218_v11 = vpop.f32.mrf.mxu1 }
  0xb5   :  { %v219_v12 = vadd.f32 %v218_v11, %v107_v6 }
  0xb6   :  { %v236_v13 = vmul.f32 %v200_v10, %v200_v10  ;;  %v228_v58 = vmul.f32 0.5, %v200_v10 }
  0xb7   :  { %v237_v14 = vmul.f32 %v219_v12, %v219_v12  ;;  %v229_v0 = vmul.f32 0.5, %v219_v12 }
  0xb8   :  { %v244_v15 = vmul.f32 %v236_v13, %v200_v10 }
  0xb9   :  { %v245_v16 = vmul.f32 %v237_v14, %v219_v12 }
  0xba   :  { %v252_v17 = vmul.f32 0.044715, %v244_v15 }
  0xbb   :  { %v253_v18 = vmul.f32 0.044715, %v245_v16  ;;  %v201_v19 = vpop.f32.mrf.mxu0 }
  0xbc   :  { %v202_v20 = vadd.f32 %v201_v19, %v106_v5  ;;  %v220_v21 = vpop.f32.mrf.mxu1  ;;  %v260_v22 = vadd.f32 %v252_v17, %v200_v10 }
  0xbd   :  { %v221_v23 = vadd.f32 %v220_v21, %v107_v6  ;;  %v261_v24 = vadd.f32 %v253_v18, %v219_v12 }
  0xbe   :  { %v238_v25 = vmul.f32 %v202_v20, %v202_v20  ;;  %v268_v28 = vmul.f32 0.7978846, %v260_v22  ;;  %v230_v62 = vmul.f32 0.5, %v202_v20 }
  0xbf   :  { %v239_v26 = vmul.f32 %v221_v23, %v221_v23  ;;  %v269_v30 = vmul.f32 0.7978846, %v261_v24  ;;  %v231_v2 = vmul.f32 0.5, %v221_v23 }
  0xc0   :  { %v246_v27 = vmul.f32 %v238_v25, %v202_v20  ;;  %669 = vtanh.f32 %v268_v28 }
  0xc1   :  { %v247_v29 = vmul.f32 %v239_v26, %v221_v23  ;;  %671 = vtanh.f32 %v269_v30 }
  0xc2   :  { %v254_v31 = vmul.f32 0.044715, %v246_v27 }
  0xc3   :  { %v255_v32 = vmul.f32 0.044715, %v247_v29  ;;  %v204_v33 = vpop.f32.mrf.mxu0 }
  0xc4   :  { %v870_v34 = vadd.f32 %v204_v33, %v106_v5  ;;  %v223_v35 = vpop.f32.mrf.mxu1  ;;  %v262_v36 = vadd.f32 %v254_v31, %v202_v20 }
  0xc5   :  { %v872_v37 = vadd.f32 %v223_v35, %v107_v6  ;;  %v263_v38 = vadd.f32 %v255_v32, %v221_v23 }
  0xc6   :  { %v240_v39 = vmul.f32 %v870_v34, %v870_v34  ;;  %v270_v40 = vmul.f32 0.7978846, %v262_v36  ;;  %v670_v45 = vpop.eup %669  ;;  %v232_v25 = vmul.f32 0.5, %v870_v34 }
  0xc7   :  { %v241_v41 = vmul.f32 %v872_v37, %v872_v37  ;;  %v271_v42 = vmul.f32 0.7978846, %v263_v38  ;;  %v672_v47 = vpop.eup %671  ;;  %v284_v54 = vadd.f32 1.0, %v670_v45  ;;  %v233_v28 = vmul.f32 0.5, %v872_v37 }
  0xc8   :  { %v248_v43 = vmul.f32 %v240_v39, %v870_v34  ;;  %673 = vtanh.f32 %v270_v40  ;;  %v285_v59 = vadd.f32 1.0, %v672_v47  ;;  %v668_v39 = vld [vmem:[%s897_s4] ss:$0 sm:$0xff] }
  0xc9   :  { %v249_v44 = vmul.f32 %v241_v41, %v872_v37  ;;  %675 = vtanh.f32 %v271_v42  ;;  %v292_v7 = vmul.f32 %v284_v54, %v228_v58 }
  0xca   :  { %v256_v46 = vmul.f32 0.044715, %v248_v43  ;;  %v293_v11 = vmul.f32 %v285_v59, %v229_v0 }
  0xcb   :  { %v257_v48 = vmul.f32 0.044715, %v249_v44  ;;  %v206_v49 = vpop.f32.mrf.mxu0 }
  0xcc   :  { %v207_v50 = vadd.f32 %v206_v49, %v106_v5  ;;  %v225_v51 = vpop.f32.mrf.mxu1  ;;  %v264_v52 = vadd.f32 %v256_v46, %v870_v34 }
  0xcd   :  { %v226_v53 = vadd.f32 %v225_v51, %v107_v6  ;;  %v265_v55 = vadd.f32 %v257_v48, %v872_v37 }
  0xce   :  { %v674_v56 = vpop.eup %673  ;;  %v242_v57 = vmul.f32 %v207_v50, %v207_v50  ;;  %v272_v4 = vmul.f32 0.7978846, %v264_v52  ;;  %v234_v26 = vmul.f32 0.5, %v207_v50 }
  0xcf   :  { %v676_v60 = vpop.eup %675  ;;  %v243_v61 = vmul.f32 %v226_v53, %v226_v53  ;;  %v286_v63 = vadd.f32 1.0, %v674_v56  ;;  %v273_v6 = vmul.f32 0.7978846, %v265_v55  ;;  %v235_v29 = vmul.f32 0.5, %v226_v53 }
  0xd0   :  { %v250_v1 = vmul.f32 %v242_v57, %v207_v50  ;;  %v287_v3 = vadd.f32 1.0, %v676_v60  ;;  %677 = vtanh.f32 %v272_v4 }
  0xd1   :  { %v251_v5 = vmul.f32 %v243_v61, %v226_v53  ;;  %v294_v8 = vmul.f32 %v286_v63, %v230_v62  ;;  %679 = vtanh.f32 %v273_v6 }
  0xd2   :  { %v258_v9 = vmul.f32 0.044715, %v250_v1  ;;  %v295_v13 = vmul.f32 %v287_v3, %v231_v2 }
  0xd3   :  { %v259_v14 = vmul.f32 0.044715, %v251_v5  ;;  %v300_v15 = vpack.c.bf16 %v294_v8, %v292_v7 }
  0xd4   :  { %v301_v10 = vpack.c.bf16 %v295_v13, %v293_v11  ;;  %v266_v16 = vadd.f32 %v258_v9, %v207_v50 }
  0xd5   :  { %444 = vmatmul.bf16.vlgmr.msra.gmra.mxu2 %v300_v15  ;;  %v267_v17 = vadd.f32 %v259_v14, %v226_v53 }
  0xd6   :  { %463 = vmatmul.bf16.vlgmr.msra.gmra.mxu3 %v301_v10  ;;  %v274_v12 = vmul.f32 0.7978846, %v266_v16  ;;  %v678_v19 = vpop.eup %677 }
  0xd7   :  { %v275_v18 = vmul.f32 0.7978846, %v267_v17  ;;  %v680_v20 = vpop.eup %679  ;;  %v288_v21 = vadd.f32 1.0, %v678_v19 }
  0xd8   :  { %681 = vtanh.f32 %v274_v12  ;;  %v289_v23 = vadd.f32 1.0, %v680_v20 }
  0xd9   :  { %683 = vtanh.f32 %v275_v18  ;;  %v296_v31 = vmul.f32 %v288_v21, %v232_v25 }
  0xda   :  { %v297_v33 = vmul.f32 %v289_v23, %v233_v28 }
  0xde   :  { %v682_v22 = vpop.eup %681 }
  0xdf   :  { %v684_v24 = vpop.eup %683  ;;  %v290_v27 = vadd.f32 1.0, %v682_v22 }
  0xe0   :  { %v291_v30 = vadd.f32 1.0, %v684_v24 }
  0xe1   :  { %v298_v32 = vmul.f32 %v290_v27, %v234_v26 }
  0xe2   :  { %v299_v35 = vmul.f32 %v291_v30, %v235_v29 }
  0xe3   :  { %v302_v36 = vpack.c.bf16 %v298_v32, %v296_v31 }
  0xe4   :  { %v303_v38 = vpack.c.bf16 %v299_v35, %v297_v33 }
  0xe5   :  { %449 = vmatmul.bf16.gmra.mxu2 %v302_v36 }
  0xe6   :  { %468 = vmatmul.bf16.gmra.mxu3 %v303_v38 }
 0x158   :  { %v445_v40 = vpop.f32.mrf.mxu2 }
 0x159   :  { %v446_v34 = vadd.f32 %v668_v39, %v445_v40  ;;  %v464_v41 = vpop.f32.mrf.mxu3 }
 0x15b   :  { %v465_v42 = vadd.f32 %v464_v41, %v446_v34 }
 0x15d   :  { %474 = vst [vmem:[#allocation10] sm:$0xff] %v465_v42 }
 0x160   :  { %v447_v37 = vpop.f32.mrf.mxu2 }
 0x161   :  { %v448_v43 = vadd.f32 %v668_v39, %v447_v37  ;;  %v466_v44 = vpop.f32.mrf.mxu3 }
 0x163   :  { %v467_v45 = vadd.f32 %v466_v44, %v448_v43 }
 0x165   :  { %475 = vst [vmem:[#allocation10 + $0x8] sm:$0xff] %v467_v45 }
 0x168   :  { %v450_v46 = vpop.f32.mrf.mxu2 }
 0x169   :  { %v451_v47 = vadd.f32 %v668_v39, %v450_v46  ;;  %v469_v48 = vpop.f32.mrf.mxu3 }
 0x16b   :  { %v470_v49 = vadd.f32 %v469_v48, %v451_v47 }
 0x16d   :  { %476 = vst [vmem:[#allocation10 + $0x10] sm:$0xff] %v470_v49 }
 0x170   :  { %v452_v50 = vpop.f32.mrf.mxu2 }
 0x171   :  { %v453_v51 = vadd.f32 %v668_v39, %v452_v50  ;;  %v471_v52 = vpop.f32.mrf.mxu3 }
 0x173   :  { %v472_v53 = vadd.f32 %v471_v52, %v453_v51 }
 0x175   :  { %477 = vst [vmem:[#allocation10 + $0x18] sm:$0xff] %v472_v53 }
 0x176   :  { %490 = dma.vmem_to_hbm [thread:$0]  %s483_s16, 512, %s485_s18, [#allocation4], %s814_s26, %s814_s26, %s815_s27  }
 0x177   :  { %811 = dma.done.wait [#allocation4], 512  }
 0x178   :  { %812 = vsyncadd [#allocation4], 4294966784 }
 0x179   :  { %495 = vsyncpa [#allocation3], 1 }
 0x17a   :  { %496 = vsyncpa [#allocation6], 1 }
 0x17b   :  { %497 = vsyncpa [#allocation9], 1 }
 0x17c   :  { %498 = vsyncpa [#allocation4], 1 }

</bundles_post_ra>
